<compile_context>
chip_gen: v5e
topology: v5e:2x2
jax: 0.10.0
libtpu: 0.0.40
codegen_flags: <defaults>
</compile_context>

<pallas_src>
import functools

import jax
import jax.numpy as jnp
from jax.experimental import pallas as pl
from jax.experimental.pallas import tpu as pltpu  # noqa: F401  (kept for TPU-specific tuning hooks)

n_embd = 32
block_size = 8
num_heads = 4
head_size = n_embd // num_heads
LN_EPS = 1e-5
NEG_INF = -1e30  # large finite stand-in for -inf; exp() underflows to exactly 0


def block_kernel(x_ref,
                 g1_ref, be1_ref,          # LayerNorm 1 (gamma, beta)      (1, C) f32
                 wqkv_ref,                 # fused QKV, head-major          (H, C, 3*hs) bf16
                 wo_ref, bo_ref,           # attention output projection    (H, hs, C) bf16, (1, C) f32
                 g2_ref, be2_ref,          # LayerNorm 2                    (1, C) f32
                 w1_ref, b1_ref,           # FFN linear 1                   (C, C) bf16, (1, C) f32
                 w2_ref, b2_ref,           # FFN linear 2                   (C, C) bf16, (1, C) f32
                 out_ref,                  # (B*T, C) f32
                 *, seq_len):
    x = x_ref[...]                         # (B*T, C) f32 -- all tokens in one slab
    tokens, C = x.shape
    H = num_heads
    hs = head_size
    n_seq = tokens // seq_len              # static Python int

    def layernorm(z, g, b):
        mu = jnp.mean(z, axis=-1, keepdims=True)
        var = jnp.mean((z - mu) ** 2, axis=-1, keepdims=True)   # biased, like torch
        return (z - mu) * jax.lax.rsqrt(var + LN_EPS) * g + b

    # ---------------- multi-head attention on LN1(x) ----------------
    h = layernorm(x, g1_ref[...], be1_ref[...])                  # f32
    h16 = h.astype(jnp.bfloat16)                                 # bf16 only at MXU inputs

    # One fused QKV projection for all heads (head-batched matmul).
    hb = jnp.broadcast_to(h16[None, :, :], (H, tokens, C))
    qkv = jnp.einsum('ntc,ncd->ntd', hb, wqkv_ref[...],
                     preferred_element_type=jnp.float32)         # (H, tokens, 3*hs) f32
    q = qkv[..., 0 * hs:1 * hs].astype(jnp.bfloat16)             # C**-0.5 already folded into W_q
    k = qkv[..., 1 * hs:2 * hs].astype(jnp.bfloat16)
    v = qkv[..., 2 * hs:3 * hs].astype(jnp.bfloat16)

    # Scores over the flattened token axis; the mask is causal AND block-diagonal
    # per sequence, so all heads/batches share one batched matmul (no transposes).
    s = jnp.einsum('nqd,nkd->nqk', q, k,
                   preferred_element_type=jnp.float32)           # (H, tokens, tokens) f32
    row = jax.lax.broadcasted_iota(jnp.int32, (H, tokens, tokens), 1)
    col = jax.lax.broadcasted_iota(jnp.int32, (H, tokens, tokens), 2)
    causal = row >= col
    allow = None
    for b in range(n_seq):                 # per-sequence block-diagonal, built with cmp/and/or only
        lo, hi = b * seq_len, (b + 1) * seq_len
        term = causal & (col >= lo) & (row < hi)
        allow = term if allow is None else (allow | term)
    s = jnp.where(allow, s, NEG_INF)

    m = jnp.max(s, axis=-1, keepdims=True)
    p = jnp.exp(s - m)
    denom = jnp.sum(p, axis=-1, keepdims=True)
    p = p * pl.reciprocal(denom, approx=True)                    # divide on EUP, not VALU

    o = jnp.einsum('nqk,nkd->nqd', p.astype(jnp.bfloat16), v,
                   preferred_element_type=jnp.float32)           # (H, tokens, hs) f32

    # Output projection with the head-concat folded in:
    #   concat_h(o_h) @ Wo == sum_h o_h @ Wo[h*hs:(h+1)*hs, :]
    proj = jnp.einsum('ntd,ndc->ntc', o.astype(jnp.bfloat16), wo_ref[...],
                      preferred_element_type=jnp.float32)        # (H, tokens, C) f32
    sa = jnp.sum(proj, axis=0) + bo_ref[...]                     # (tokens, C) f32

    x1 = x + sa

    # ---------------- feed-forward on LN2(x1) ----------------
    h2 = layernorm(x1, g2_ref[...], be2_ref[...]).astype(jnp.bfloat16)
    ff = jnp.dot(h2, w1_ref[...], preferred_element_type=jnp.float32) + b1_ref[...]
    ff = jnp.maximum(ff, 0.0).astype(jnp.bfloat16)
    ff = jnp.dot(ff, w2_ref[...], preferred_element_type=jnp.float32) + b2_ref[...]
    # TODO(synk): dropout (reference's `dropout` global is undefined) -> identity / eval mode.

    out_ref[...] = x1 + ff


def pack_params(params):
    """Reorganize PyTorch-layout params for the kernel (wrapper-side, zero in-kernel cost).

    - fused head-major QKV weight (H, C, 3*hs), attention scale C**-0.5 folded
      into the Q columns,
    - output projection reshaped to (H, hs, C) so the per-head concat becomes a sum,
    - all matmul weights pre-cast to bf16 (f32 accumulation in the kernel);
      LN params and biases stay f32.
    """
    g1, beta1, wq, wk, wv, wo, bo, g2, beta2, w1, b1, w2, b2 = params
    C, H, hs = n_embd, num_heads, head_size
    scale = C ** (-0.5)        # NOTE: reference scales by n_embd (C), not head_size
    wq_s = wq * scale
    wqkv = jnp.stack(
        [jnp.concatenate([wq_s[:, h * hs:(h + 1) * hs],
                          wk[:, h * hs:(h + 1) * hs],
                          wv[:, h * hs:(h + 1) * hs]], axis=1)
         for h in range(H)], axis=0).astype(jnp.bfloat16)        # (H, C, 3*hs)
    wo3 = wo.reshape(H, hs, C).astype(jnp.bfloat16)              # (H, hs, C)
    return (g1, beta1, wqkv, wo3, bo, g2, beta2,
            w1.astype(jnp.bfloat16), b1, w2.astype(jnp.bfloat16), b2)


def transformer_block(x, params):
    B, T, C = x.shape
    packed = pack_params(params)            # could be hoisted to init time
    x2d = x.reshape(B * T, C)               # collapse batch: one kernel invocation, no grid
    kernel = functools.partial(block_kernel, seq_len=T)
    out = pl.pallas_call(
        kernel,
        out_shape=jax.ShapeDtypeStruct((B * T, C), jnp.float32),
        # No grid / BlockSpecs: every operand (~30 KiB total) lives whole in
        # VMEM, so there is no per-step pipeline overhead and no reason to
        # shard this overhead-bound kernel across TensorCores.
    )(x2d, *packed)
    return out.reshape(B, T, C)


def init_params(key):
    C = n_embd
    ks = jax.random.split(key, 10)
    bound = 1.0 / (C ** 0.5)

    def u(k, shape):
        return jax.random.uniform(k, shape, jnp.float32, -bound, bound)

    g1 = jnp.ones((1, C), jnp.float32)
    beta1 = jnp.zeros((1, C), jnp.float32)
    wq = u(ks[0], (C, C))
    wk = u(ks[1], (C, C))
    wv = u(ks[2], (C, C))
    wo = u(ks[3], (C, C))
    bo = u(ks[4], (1, C))
    g2 = jnp.ones((1, C), jnp.float32)
    beta2 = jnp.zeros((1, C), jnp.float32)
    w1 = u(ks[5], (C, C))
    b1 = u(ks[6], (1, C))
    w2 = u(ks[7], (C, C))
    b2 = u(ks[8], (1, C))
    return [g1, beta1, wq, wk, wv, wo, bo, g2, beta2, w1, b1, w2, b2]


if __name__ == "__main__":
    key = jax.random.PRNGKey(0)
    kx, kp = jax.random.split(key)
    B, T, C = 2, block_size, n_embd
    x = jax.random.normal(kx, (B, T, C), jnp.float32)
    params = init_params(kp)

    out = transformer_block(x, params)
    out = jax.block_until_ready(out)
    assert out.shape == (B, T, C)
    print("KERNEL_OK")
</pallas_src>

<mosaic_0001>
module attributes {stable_mosaic.version = 11 : i64} {
  func.func @block_kernel(%arg0: memref<16x32xf32, #tpu.memory_space<vmem>>, %arg1: memref<1x32xf32, #tpu.memory_space<vmem>>, %arg2: memref<1x32xf32, #tpu.memory_space<vmem>>, %arg3: memref<4x32x24xbf16, #tpu.memory_space<vmem>>, %arg4: memref<4x8x32xbf16, #tpu.memory_space<vmem>>, %arg5: memref<1x32xf32, #tpu.memory_space<vmem>>, %arg6: memref<1x32xf32, #tpu.memory_space<vmem>>, %arg7: memref<1x32xf32, #tpu.memory_space<vmem>>, %arg8: memref<32x32xbf16, #tpu.memory_space<vmem>>, %arg9: memref<1x32xf32, #tpu.memory_space<vmem>>, %arg10: memref<32x32xbf16, #tpu.memory_space<vmem>>, %arg11: memref<1x32xf32, #tpu.memory_space<vmem>>, %arg12: memref<16x32xf32, #tpu.memory_space<vmem>>) attributes {dimension_semantics = [], scalar_prefetch = 0 : i64, scratch_operands = 0 : i64, tpu.core_type = #tpu.core_type<tc>} {
    %c0 = arith.constant 0 : index
    %c0_0 = arith.constant 0 : index
    %0 = vector.load %arg0[%c0, %c0_0] : memref<16x32xf32, #tpu.memory_space<vmem>>, vector<16x32xf32>
    %c0_1 = arith.constant 0 : index
    %c0_2 = arith.constant 0 : index
    %1 = vector.load %arg1[%c0_1, %c0_2] : memref<1x32xf32, #tpu.memory_space<vmem>>, vector<1x32xf32>
    %c0_3 = arith.constant 0 : index
    %c0_4 = arith.constant 0 : index
    %2 = vector.load %arg2[%c0_3, %c0_4] : memref<1x32xf32, #tpu.memory_space<vmem>>, vector<1x32xf32>
    %cst = arith.constant dense<0.000000e+00> : vector<16xf32>
    %3 = vector.multi_reduction <add>, %0, %cst [1] : vector<16x32xf32> to vector<16xf32>
    %4 = vector.shape_cast %3 : vector<16xf32> to vector<16x1xf32>
    %cst_5 = arith.constant 3.200000e+01 : f32
    %5 = vector.broadcast %cst_5 : f32 to vector<16x1xf32>
    %6 = arith.divf %4, %5 : vector<16x1xf32>
    %7 = vector.broadcast %6 : vector<16x1xf32> to vector<16x32xf32>
    %8 = arith.subf %0, %7 : vector<16x32xf32>
    %9 = arith.mulf %8, %8 : vector<16x32xf32>
    %cst_6 = arith.constant dense<0.000000e+00> : vector<16xf32>
    %10 = vector.multi_reduction <add>, %9, %cst_6 [1] : vector<16x32xf32> to vector<16xf32>
    %11 = vector.shape_cast %10 : vector<16xf32> to vector<16x1xf32>
    %cst_7 = arith.constant 3.200000e+01 : f32
    %12 = vector.broadcast %cst_7 : f32 to vector<16x1xf32>
    %13 = arith.divf %11, %12 : vector<16x1xf32>
    %14 = vector.broadcast %6 : vector<16x1xf32> to vector<16x32xf32>
    %15 = arith.subf %0, %14 : vector<16x32xf32>
    %cst_8 = arith.constant 9.99999974E-6 : f32
    %16 = vector.broadcast %cst_8 : f32 to vector<16x1xf32>
    %17 = arith.addf %13, %16 : vector<16x1xf32>
    %18 = math.rsqrt %17 : vector<16x1xf32>
    %19 = vector.broadcast %18 : vector<16x1xf32> to vector<16x32xf32>
    %20 = arith.mulf %15, %19 : vector<16x32xf32>
    %21 = vector.broadcast %1 : vector<1x32xf32> to vector<16x32xf32>
    %22 = arith.mulf %20, %21 : vector<16x32xf32>
    %23 = vector.broadcast %2 : vector<1x32xf32> to vector<16x32xf32>
    %24 = arith.addf %22, %23 : vector<16x32xf32>
    %25 = arith.truncf %24 : vector<16x32xf32> to vector<16x32xbf16>
    %26 = vector.shape_cast %25 : vector<16x32xbf16> to vector<1x16x32xbf16>
    %27 = vector.shape_cast %26 : vector<1x16x32xbf16> to vector<1x16x32xbf16>
    %28 = vector.broadcast %27 : vector<1x16x32xbf16> to vector<4x16x32xbf16>
    %c0_9 = arith.constant 0 : index
    %c0_10 = arith.constant 0 : index
    %c0_11 = arith.constant 0 : index
    %29 = vector.load %arg3[%c0_9, %c0_10, %c0_11] : memref<4x32x24xbf16, #tpu.memory_space<vmem>>, vector<4x32x24xbf16>
    "tpu.trace_start"() <{level = 10 : i32, message = "ntc,ncd->ntd"}> : () -> ()
    %cst_12 = arith.constant dense<0.000000e+00> : vector<4x16x24xf32>
    %30 = tpu.matmul %28, %29, %cst_12 {dimension_numbers = #tpu.dot_dimension_numbers<[2], [1], [1], [2], [0, 0, 0, 1, 1, 2], [0], [0]>} : vector<4x16x32xbf16>, vector<4x32x24xbf16>, vector<4x16x24xf32> -> vector<4x16x24xf32>
    "tpu.trace_stop"() : () -> ()
    %31 = vector.extract_strided_slice %30 {offsets = [0, 0, 0], sizes = [4, 16, 8], strides = [1, 1, 1]} : vector<4x16x24xf32> to vector<4x16x8xf32>
    %32 = arith.truncf %31 : vector<4x16x8xf32> to vector<4x16x8xbf16>
    %33 = vector.extract_strided_slice %30 {offsets = [0, 0, 8], sizes = [4, 16, 8], strides = [1, 1, 1]} : vector<4x16x24xf32> to vector<4x16x8xf32>
    %34 = arith.truncf %33 : vector<4x16x8xf32> to vector<4x16x8xbf16>
    %35 = vector.extract_strided_slice %30 {offsets = [0, 0, 16], sizes = [4, 16, 8], strides = [1, 1, 1]} : vector<4x16x24xf32> to vector<4x16x8xf32>
    %36 = arith.truncf %35 : vector<4x16x8xf32> to vector<4x16x8xbf16>
    "tpu.trace_start"() <{level = 10 : i32, message = "nqd,nkd->nqk"}> : () -> ()
    %cst_13 = arith.constant dense<0.000000e+00> : vector<4x16x16xf32>
    %37 = tpu.matmul %32, %34, %cst_13 {dimension_numbers = #tpu.dot_dimension_numbers<[2], [2], [1], [1], [0, 0, 0, 1, 1, 1], [0], [0]>} : vector<4x16x8xbf16>, vector<4x16x8xbf16>, vector<4x16x16xf32> -> vector<4x16x16xf32>
    "tpu.trace_stop"() : () -> ()
    %38 = tpu.iota {dimensions = array<i32: 1>} : vector<4x16x16xi32>
    %39 = tpu.iota {dimensions = array<i32: 2>} : vector<4x16x16xi32>
    %40 = arith.cmpi sge, %38, %39 : vector<4x16x16xi32>
    %c0_i32 = arith.constant 0 : i32
    %41 = vector.broadcast %c0_i32 : i32 to vector<4x16x16xi32>
    %42 = arith.cmpi sge, %39, %41 : vector<4x16x16xi32>
    %43 = arith.andi %40, %42 : vector<4x16x16xi1>
    %c8_i32 = arith.constant 8 : i32
    %44 = vector.broadcast %c8_i32 : i32 to vector<4x16x16xi32>
    %45 = arith.cmpi slt, %38, %44 : vector<4x16x16xi32>
    %46 = arith.andi %43, %45 : vector<4x16x16xi1>
    %c8_i32_14 = arith.constant 8 : i32
    %47 = vector.broadcast %c8_i32_14 : i32 to vector<4x16x16xi32>
    %48 = arith.cmpi sge, %39, %47 : vector<4x16x16xi32>
    %49 = arith.andi %40, %48 : vector<4x16x16xi1>
    %c16_i32 = arith.constant 16 : i32
    %50 = vector.broadcast %c16_i32 : i32 to vector<4x16x16xi32>
    %51 = arith.cmpi slt, %38, %50 : vector<4x16x16xi32>
    %52 = arith.andi %49, %51 : vector<4x16x16xi1>
    %53 = arith.ori %46, %52 : vector<4x16x16xi1>
    %cst_15 = arith.constant -1.000000e+30 : f32
    %54 = vector.broadcast %cst_15 : f32 to vector<4x16x16xf32>
    %55 = arith.select %53, %37, %54 : vector<4x16x16xi1>, vector<4x16x16xf32>
    %cst_16 = arith.constant dense<0xFF800000> : vector<4x16xf32>
    %56 = vector.multi_reduction <maximumf>, %55, %cst_16 [2] : vector<4x16x16xf32> to vector<4x16xf32>
    %57 = vector.shape_cast %56 : vector<4x16xf32> to vector<4x16x1xf32>
    %58 = vector.broadcast %57 : vector<4x16x1xf32> to vector<4x16x16xf32>
    %59 = arith.subf %55, %58 : vector<4x16x16xf32>
    %60 = math.exp %59 : vector<4x16x16xf32>
    %cst_17 = arith.constant dense<0.000000e+00> : vector<4x16xf32>
    %61 = vector.multi_reduction <add>, %60, %cst_17 [2] : vector<4x16x16xf32> to vector<4x16xf32>
    %62 = vector.shape_cast %61 : vector<4x16xf32> to vector<4x16x1xf32>
    %63 = tpu.reciprocal %62 {approx = true} : vector<4x16x1xf32> -> vector<4x16x1xf32>
    %64 = vector.broadcast %63 : vector<4x16x1xf32> to vector<4x16x16xf32>
    %65 = arith.mulf %60, %64 : vector<4x16x16xf32>
    %66 = arith.truncf %65 : vector<4x16x16xf32> to vector<4x16x16xbf16>
    "tpu.trace_start"() <{level = 10 : i32, message = "nqk,nkd->nqd"}> : () -> ()
    %cst_18 = arith.constant dense<0.000000e+00> : vector<4x16x8xf32>
    %67 = tpu.matmul %66, %36, %cst_18 {dimension_numbers = #tpu.dot_dimension_numbers<[2], [1], [1], [2], [0, 0, 0, 1, 1, 2], [0], [0]>} : vector<4x16x16xbf16>, vector<4x16x8xbf16>, vector<4x16x8xf32> -> vector<4x16x8xf32>
    "tpu.trace_stop"() : () -> ()
    %68 = arith.truncf %67 : vector<4x16x8xf32> to vector<4x16x8xbf16>
    %c0_19 = arith.constant 0 : index
    %c0_20 = arith.constant 0 : index
    %c0_21 = arith.constant 0 : index
    %69 = vector.load %arg4[%c0_19, %c0_20, %c0_21] : memref<4x8x32xbf16, #tpu.memory_space<vmem>>, vector<4x8x32xbf16>
    "tpu.trace_start"() <{level = 10 : i32, message = "ntd,ndc->ntc"}> : () -> ()
    %cst_22 = arith.constant dense<0.000000e+00> : vector<4x16x32xf32>
    %70 = tpu.matmul %68, %69, %cst_22 {dimension_numbers = #tpu.dot_dimension_numbers<[2], [1], [1], [2], [0, 0, 0, 1, 1, 2], [0], [0]>} : vector<4x16x8xbf16>, vector<4x8x32xbf16>, vector<4x16x32xf32> -> vector<4x16x32xf32>
    "tpu.trace_stop"() : () -> ()
    %cst_23 = arith.constant dense<0.000000e+00> : vector<16x32xf32>
    %71 = vector.multi_reduction <add>, %70, %cst_23 [0] : vector<4x16x32xf32> to vector<16x32xf32>
    %c0_24 = arith.constant 0 : index
    %c0_25 = arith.constant 0 : index
    %72 = vector.load %arg5[%c0_24, %c0_25] : memref<1x32xf32, #tpu.memory_space<vmem>>, vector<1x32xf32>
    %73 = vector.broadcast %72 : vector<1x32xf32> to vector<16x32xf32>
    %74 = arith.addf %71, %73 : vector<16x32xf32>
    %75 = arith.addf %0, %74 : vector<16x32xf32>
    %c0_26 = arith.constant 0 : index
    %c0_27 = arith.constant 0 : index
    %76 = vector.load %arg6[%c0_26, %c0_27] : memref<1x32xf32, #tpu.memory_space<vmem>>, vector<1x32xf32>
    %c0_28 = arith.constant 0 : index
    %c0_29 = arith.constant 0 : index
    %77 = vector.load %arg7[%c0_28, %c0_29] : memref<1x32xf32, #tpu.memory_space<vmem>>, vector<1x32xf32>
    %cst_30 = arith.constant dense<0.000000e+00> : vector<16xf32>
    %78 = vector.multi_reduction <add>, %75, %cst_30 [1] : vector<16x32xf32> to vector<16xf32>
    %79 = vector.shape_cast %78 : vector<16xf32> to vector<16x1xf32>
    %cst_31 = arith.constant 3.200000e+01 : f32
    %80 = vector.broadcast %cst_31 : f32 to vector<16x1xf32>
    %81 = arith.divf %79, %80 : vector<16x1xf32>
    %82 = vector.broadcast %81 : vector<16x1xf32> to vector<16x32xf32>
    %83 = arith.subf %75, %82 : vector<16x32xf32>
    %84 = arith.mulf %83, %83 : vector<16x32xf32>
    %cst_32 = arith.constant dense<0.000000e+00> : vector<16xf32>
    %85 = vector.multi_reduction <add>, %84, %cst_32 [1] : vector<16x32xf32> to vector<16xf32>
    %86 = vector.shape_cast %85 : vector<16xf32> to vector<16x1xf32>
    %cst_33 = arith.constant 3.200000e+01 : f32
    %87 = vector.broadcast %cst_33 : f32 to vector<16x1xf32>
    %88 = arith.divf %86, %87 : vector<16x1xf32>
    %89 = vector.broadcast %81 : vector<16x1xf32> to vector<16x32xf32>
    %90 = arith.subf %75, %89 : vector<16x32xf32>
    %cst_34 = arith.constant 9.99999974E-6 : f32
    %91 = vector.broadcast %cst_34 : f32 to vector<16x1xf32>
    %92 = arith.addf %88, %91 : vector<16x1xf32>
    %93 = math.rsqrt %92 : vector<16x1xf32>
    %94 = vector.broadcast %93 : vector<16x1xf32> to vector<16x32xf32>
    %95 = arith.mulf %90, %94 : vector<16x32xf32>
    %96 = vector.broadcast %76 : vector<1x32xf32> to vector<16x32xf32>
    %97 = arith.mulf %95, %96 : vector<16x32xf32>
    %98 = vector.broadcast %77 : vector<1x32xf32> to vector<16x32xf32>
    %99 = arith.addf %97, %98 : vector<16x32xf32>
    %100 = arith.truncf %99 : vector<16x32xf32> to vector<16x32xbf16>
    %c0_35 = arith.constant 0 : index
    %c0_36 = arith.constant 0 : index
    %101 = vector.load %arg8[%c0_35, %c0_36] : memref<32x32xbf16, #tpu.memory_space<vmem>>, vector<32x32xbf16>
    %cst_37 = arith.constant dense<0.000000e+00> : vector<16x32xf32>
    %102 = tpu.matmul %100, %101, %cst_37 {dimension_numbers = #tpu.dot_dimension_numbers<[1], [0], [0], [1], [0, 0, 1, 1], [], []>} : vector<16x32xbf16>, vector<32x32xbf16>, vector<16x32xf32> -> vector<16x32xf32>
    %c0_38 = arith.constant 0 : index
    %c0_39 = arith.constant 0 : index
    %103 = vector.load %arg9[%c0_38, %c0_39] : memref<1x32xf32, #tpu.memory_space<vmem>>, vector<1x32xf32>
    %104 = vector.broadcast %103 : vector<1x32xf32> to vector<16x32xf32>
    %105 = arith.addf %102, %104 : vector<16x32xf32>
    %cst_40 = arith.constant 0.000000e+00 : f32
    %106 = vector.broadcast %cst_40 : f32 to vector<16x32xf32>
    %107 = arith.maximumf %105, %106 : vector<16x32xf32>
    %108 = arith.truncf %107 : vector<16x32xf32> to vector<16x32xbf16>
    %c0_41 = arith.constant 0 : index
    %c0_42 = arith.constant 0 : index
    %109 = vector.load %arg10[%c0_41, %c0_42] : memref<32x32xbf16, #tpu.memory_space<vmem>>, vector<32x32xbf16>
    %cst_43 = arith.constant dense<0.000000e+00> : vector<16x32xf32>
    %110 = tpu.matmul %108, %109, %cst_43 {dimension_numbers = #tpu.dot_dimension_numbers<[1], [0], [0], [1], [0, 0, 1, 1], [], []>} : vector<16x32xbf16>, vector<32x32xbf16>, vector<16x32xf32> -> vector<16x32xf32>
    %c0_44 = arith.constant 0 : index
    %c0_45 = arith.constant 0 : index
    %111 = vector.load %arg11[%c0_44, %c0_45] : memref<1x32xf32, #tpu.memory_space<vmem>>, vector<1x32xf32>
    %112 = vector.broadcast %111 : vector<1x32xf32> to vector<16x32xf32>
    %113 = arith.addf %110, %112 : vector<16x32xf32>
    %114 = arith.addf %75, %113 : vector<16x32xf32>
    %c0_46 = arith.constant 0 : index
    %c0_47 = arith.constant 0 : index
    %115 = vector.load %arg12[%c0_46, %c0_47] : memref<16x32xf32, #tpu.memory_space<vmem>>, vector<16x32xf32>
    tpu.vector_store %arg12[%c0_46, %c0_47], %114 {strides = array<i32>} : memref<16x32xf32, #tpu.memory_space<vmem>>, vector<16x32xf32>,
    return
  }
}

</mosaic_0001>

<bundles_post_ra>
// kernel: tpu_custom_call.1
= control target key start
LH: loop header
LB: loop body
LE: loop exit
PB: predicated region body
PF: predicated region fallthrough
CT: control target
= control target key end

     0   :  { %vm47_vm0 = vcmask 261120   ;;  %s1333_s0 = inlined_call_operand.vmem [shape: f32[16,32], index: 0, kind: input, shape index: {}]   ;;  %s1334_s1 = inlined_call_operand.vmem [shape: f32[1,32], index: 1, kind: input, shape index: {}]   ;;  %s1335_s2 = inlined_call_operand.vmem [shape: f32[1,32], index: 2, kind: input, shape index: {}]   ;;  %s1336_s3 = inlined_call_operand.vmem [shape: bf16[4,32,24], index: 3, kind: input, shape index: {}]   ;;  %s1337_s4 = inlined_call_operand.vmem [shape: bf16[4,8,32], index: 4, kind: input, shape index: {}]   ;;  %s1338_s5 = inlined_call_operand.vmem [shape: f32[1,32], index: 5, kind: input, shape index: {}]   ;;  %s1339_s6 = inlined_call_operand.vmem [shape: f32[1,32], index: 6, kind: input, shape index: {}]   ;;  %s1340_s7 = inlined_call_operand.vmem [shape: f32[1,32], index: 7, kind: input, shape index: {}]   ;;  %s1341_s8 = inlined_call_operand.vmem [shape: bf16[32,32], index: 8, kind: input, shape index: {}]   ;;  %s1342_s9 = inlined_call_operand.vmem [shape: f32[1,32], index: 9, kind: input, shape index: {}]   ;;  %s1343_s10 = inlined_call_operand.vmem [shape: bf16[32,32], index: 10, kind: input, shape index: {}]   ;;  %s1344_s11 = inlined_call_operand.vmem [shape: f32[1,32], index: 11, kind: input, shape index: {}]   ;;  %s1345_s12 = inlined_call_operand.hbm [shape: f32[16,32], index: 12, kind: output, shape index: {}]  }
   0x1   :  { %v1108_v0 = vld [vmem:[%s1333_s0] sm:$0xff] }
   0x2   :  { %v48_v1 = vsel %vm47_vm0, %v1108_v0, 0.0 }
   0x3   :  { %49 = vadd.xlane.f32.xlu0 %v48_v1 }
   0x4   :  { %17 = vsyncpa [#allocation3], 0  ;;  %v1115_v2 = vld [vmem:[%s1333_s0 + $0x8] sm:$0xff]  ;;  %v1034_v4 = vmov 32.0   ;;  %v944_v24 = vld [vmem:[%s1336_s3 + $0x18] sm:$0xff]  ;;  %vm254_vm8 = vcmask 64512  }
   0x5   :  { %v51_v3 = vsel %vm47_vm0, %v1115_v2, 0.0  ;;  %966 = vrcp.f32 %v1034_v4  ;;  %v942_v23 = vld [vmem:[%s1336_s3 + $0x8] sm:$0xff]  ;;  %v948_v26 = vld [vmem:[%s1336_s3 + $0x38] sm:$0xff]  ;;  %179 = vmatpush.bf16.msra.mxu1 %v944_v24  ;;  %v941_v28 = vld [vmem:[%s1336_s3] sm:$0xff]  ;;  %vm387_vm13 = vcmask 130048   ;;  %s863_s25 = sshll.u32 %s1345_s12, 4  ;;  %s864_s25 = int_to_ptr.hbm [resolvable:$true] %s863_s25 }
   0x6   :  { %v946_v25 = vld [vmem:[%s1336_s3 + $0x28] sm:$0xff]  ;;  %153 = vmatpush.bf16.msra.mxu0 %v942_v23  ;;  %v943_v29 = vld [vmem:[%s1336_s3 + $0x10] sm:$0xff]  ;;  %231 = vmatpush.bf16.msra.mxu3 %v948_v26  ;;  %v945_v30 = vld [vmem:[%s1336_s3 + $0x20] sm:$0xff]  ;;  %s1039_s26 = smov 8  }
   0x7   :  { %205 = vmatpush.bf16.msra.mxu2 %v946_v25  ;;  %v947_v31 = vld [vmem:[%s1336_s3 + $0x30] sm:$0xff]  ;;  %v959_v45 = vld [vmem:[%s1334_s1] ss:$0 sm:$0xff]  ;;  %s1035_s1 = smov 120  }
   0x8   :  { %v960_v50 = vld [vmem:[%s1335_s2] ss:$0 sm:$0xff]  ;;  %s1036_s2 = smov 112  }
   0x9   :  { %180 = vmatpush.bf16.msra.mxu1 %v943_v29 }
   0xa   :  { %154 = vmatpush.bf16.msra.mxu0 %v941_v28  ;;  %232 = vmatpush.bf16.msra.mxu3 %v947_v31 }
   0xb   :  { %52 = vadd.xlane.f32.xlu0 %v51_v3  ;;  %v967_v5 = vpop.eup %966  ;;  %206 = vmatpush.bf16.msra.mxu2 %v945_v30 }
   0xc   :  { %v55_v6 = vmul.f32 32.0, %v967_v5  ;;  %vm59_vm1 = vweird.f32 %v967_v5 }
   0xe   :  { %v56_v7 = vsub.f32 1.0, %v55_v6 }
  0x10   :  { %v57_v8 = vmul.f32 %v967_v5, %v56_v7 }
  0x12   :  { %v58_v9 = vadd.f32 %v967_v5, %v57_v8 }
  0x14   :  { %v1119_v10 = vsel %vm59_vm1, %v967_v5, %v58_v9  ;;  %vm604_vm1 = vcmask 1043456  }
  0x76   :  { %v50_v11 = vpop.xlane.xlu0 %49 }
  0x77   :  { %v61_v12 = vmul.f32 %v1119_v10, %v50_v11 }
  0x79   :  { %v63_v13 = vsub.f32 %v1108_v0, %v61_v12 }
  0x7b   :  { %v65_v14 = vmul.f32 %v63_v13, %v63_v13 }
  0x7d   :  { %v67_v15 = vsel %vm47_vm0, %v65_v14, 0.0 }
  0x7e   :  { %68 = vadd.xlane.f32.xlu1 %v67_v15  ;;  %v53_v16 = vpop.xlane.xlu0 %52 }
  0x7f   :  { %v62_v17 = vmul.f32 %v1119_v10, %v53_v16 }
  0x81   :  { %v64_v18 = vsub.f32 %v1115_v2, %v62_v17 }
  0x83   :  { %v66_v19 = vmul.f32 %v64_v18, %v64_v18 }
  0x85   :  { %v70_v20 = vsel %vm47_vm0, %v66_v19, 0.0 }
  0x86   :  { %71 = vadd.xlane.f32.xlu1 %v70_v20 }
  0xf1   :  { %v69_v21 = vpop.xlane.xlu1 %68 }
  0xf2   :  { %v73_v22 = vmul.f32 %v69_v21, %v1119_v10 }
  0xf4   :  { %v75_v27 = vadd.f32 1e-05, %v73_v22 }
  0xf6   :  { %968 = vrsqrt.f32 %v75_v27  ;;  %vm83_vm3 = vweird.f32 %v75_v27 }
  0xf9   :  { %v72_v32 = vpop.xlane.xlu1 %71 }
  0xfa   :  { %v74_v33 = vmul.f32 %v72_v32, %v1119_v10 }
  0xfc   :  { %v969_v34 = vpop.eup %968  ;;  %v76_v35 = vadd.f32 1e-05, %v74_v33 }
  0xfd   :  { %v78_v36 = vmul.f32 %v969_v34, %v75_v27  ;;  %vm84_vm2 = vweird.f32 %v969_v34 }
  0xfe   :  { %970 = vrsqrt.f32 %v76_v35  ;;  %vm85_vm4 = vmor %vm83_vm3, %vm84_vm2  ;;  %vm93_vm6 = vweird.f32 %v76_v35 }
  0xff   :  { %v79_v37 = vmul.f32 %v969_v34, %v78_v36 }
 0x101   :  { %v80_v38 = vmul.f32 0.5, %v79_v37  ;;  %v356_v37 = vlaneseq }
 0x103   :  { %v81_v39 = vsub.f32 1.5, %v80_v38  ;;  %v357_v38 = vshrl.u32 %v356_v37, 7 }
 0x104   :  { %v971_v40 = vpop.eup %970 }
 0x105   :  { %v82_v41 = vmul.f32 %v969_v34, %v81_v39  ;;  %v88_v42 = vmul.f32 %v971_v40, %v76_v35  ;;  %vm94_vm5 = vweird.f32 %v971_v40  ;;  %v360_v39 = vand.u32 127, %v356_v37 }
 0x106   :  { %vm95_vm7 = vmor %vm93_vm6, %vm94_vm5 }
 0x107   :  { %v86_v43 = vsel %vm85_vm4, %v969_v34, %v82_v41  ;;  %v89_v44 = vmul.f32 %v971_v40, %v88_v42  ;;  %vm361_vm9 = vcmp.ge.s32.totalorder %v357_v38, %v360_v39  ;;  %vm370_vm10 = vcmp.ge.s32.totalorder %v360_v39, 8 }
 0x108   :  { %v97_v46 = vmul.f32 %v86_v43, %v63_v13  ;;  %vm371_vm11 = vmand %vm361_vm9, %vm370_vm10  ;;  %v358_v41 = vadd.s32 8, %v357_v38 }
 0x109   :  { %v90_v47 = vmul.f32 0.5, %v89_v44  ;;  %vm1187_vm12 = vmor %vm361_vm9, %vm371_vm11 }
 0x10a   :  { %v102_v49 = vmul.f32 %v959_v45, %v97_v46  ;;  %vm362_vm14 = vcmp.ge.s32.totalorder %v358_v41, %v360_v39 }
 0x10b   :  { %v91_v48 = vsub.f32 1.5, %v90_v47  ;;  %vm1194_vm15 = vmand %vm362_vm14, %vm370_vm10 }
 0x10c   :  { %v107_v54 = vadd.f32 %v960_v50, %v102_v49 }
 0x10d   :  { %v92_v51 = vmul.f32 %v971_v40, %v91_v48 }
 0x10e   :  { %v109_v57 = vpack.c.bf16 %v107_v54, %v107_v54 }
 0x10f   :  { %v96_v52 = vsel %vm95_vm7, %v971_v40, %v92_v51 }
 0x110   :  { %v98_v53 = vmul.f32 %v96_v52, %v64_v18  ;;  %v129_v59 = vunpack.c.l.b16 %v109_v57 }
 0x112   :  { %v103_v55 = vmul.f32 %v959_v45, %v98_v53 }
 0x114   :  { %v108_v56 = vadd.f32 %v960_v50, %v103_v55 }
 0x116   :  { %v110_v58 = vpack.c.bf16 %v108_v56, %v108_v56 }
 0x118   :  { %v130_v60 = vunpack.c.l.b16 %v110_v58 }
 0x11a   :  { %v131_v61 = vpack.c.b16 %v130_v60, %v129_v59 }
 0x11c   :  { %883 = vmatmul.msk.bf16.vlgmr.msra.gmra.mxu0 %vm47_vm0, %v131_v61  ;;  %892 = vmatmul.msk.bf16.vlgmr.msra.gmra.mxu1 %vm47_vm0, %v131_v61 }
 0x11d   :  { %901 = vmatmul.msk.bf16.vlgmr.msra.gmra.mxu2 %vm47_vm0, %v131_v61  ;;  %910 = vmatmul.msk.bf16.vlgmr.msra.gmra.mxu3 %vm47_vm0, %v131_v61 }
 0x199   :  { %v156_v62 = vpop.f32.mrf.mxu0  ;;  %v182_v63 = vpop.f32.mrf.mxu1 }
 0x19a   :  { %v239_v1 = vpack.c.bf16 %v156_v62, %v156_v62  ;;  %v241_v3 = vpack.c.bf16 %v182_v63, %v182_v63 }
 0x19c   :  { %v249_v11 = vunpack.c.l.b16 %v239_v1  ;;  %v277_v12 = vunpack.c.l.b16 %v241_v3 }
 0x1a0   :  { %v208_v4 = vpop.f32.mrf.mxu2  ;;  %v234_v5 = vpop.f32.mrf.mxu3 }
 0x1a1   :  { %v158_v6 = vpop.f32.mrf.mxu0  ;;  %v184_v7 = vpop.f32.mrf.mxu1  ;;  %v243_v17 = vpack.c.bf16 %v208_v4, %v208_v4  ;;  %v245_v25 = vpack.c.bf16 %v234_v5, %v234_v5 }
 0x1a2   :  { %v240_v8 = vpack.c.bf16 %v158_v6, %v158_v6  ;;  %v242_v9 = vpack.c.bf16 %v184_v7, %v184_v7 }
 0x1a3   :  { %v304_v21 = vunpack.c.l.b16 %v243_v17  ;;  %v331_v27 = vunpack.c.l.b16 %v245_v25 }
 0x1a4   :  { %v250_v13 = vunpack.c.l.b16 %v240_v8  ;;  %v278_v14 = vunpack.c.l.b16 %v242_v9 }
 0x1a6   :  { %v1163_v15 = vpack.c.b16 %v250_v13, %v249_v11  ;;  %v1165_v16 = vpack.c.b16 %v278_v14, %v277_v12 }
 0x1a8   :  { %v210_v18 = vpop.f32.mrf.mxu2  ;;  %280 = vrot.lane.b32.xlu1 %v1165_v16, %s1035_s1  ;;  %252 = vrot.lane.b32.xlu0 %v1163_v15, %s1035_s1  ;;  %v236_v20 = vpop.f32.mrf.mxu3 }
 0x1a9   :  { %v244_v19 = vpack.c.bf16 %v210_v18, %v210_v18  ;;  %v246_v24 = vpack.c.bf16 %v236_v20, %v236_v20 }
 0x1ab   :  { %v305_v22 = vunpack.c.l.b16 %v244_v19  ;;  %v332_v26 = vunpack.c.l.b16 %v246_v24 }
 0x1ad   :  { %v1169_v23 = vpack.c.b16 %v305_v22, %v304_v21  ;;  %v1172_v28 = vpack.c.b16 %v332_v26, %v331_v27 }
 0x1af   :  { %307 = vrot.lane.b32.xlu2 %v1169_v23, %s1035_s1 }
 0x1b7   :  { %334 = vrot.lane.b32.xlu2 %v1172_v28, %s1035_s1 }
 0x209   :  { %v308_v29 = vpop.permute.xlu2 %307 }
 0x20a   :  { %v313_v30 = vsel %vm254_vm8, %v308_v29, 0 }
 0x20b   :  { %322 = vmatpush.bf16.xpose.msrb.mxu2 %v313_v30 }
 0x211   :  { %v335_v31 = vpop.permute.xlu2 %334 }
 0x212   :  { %913 = vmatmul.msk.bf16.vlgmr.msrb.gmra.mxu2 %vm254_vm8, %v1169_v23  ;;  %v340_v32 = vsel %vm254_vm8, %v335_v31, 0 }
 0x213   :  { %349 = vmatpush.bf16.xpose.msrb.mxu3 %v340_v32 }
 0x21a   :  { %914 = vmatmul.msk.bf16.vlgmr.msrb.gmra.mxu3 %vm254_vm8, %v1172_v28  ;;  %v281_v33 = vpop.permute.xlu1 %280  ;;  %v253_v34 = vpop.permute.xlu0 %252 }
 0x21b   :  { %v259_v35 = vsel %vm254_vm8, %v253_v34, 0  ;;  %v286_v36 = vsel %vm254_vm8, %v281_v33, 0 }
 0x21c   :  { %268 = vmatpush.bf16.xpose.msrb.mxu0 %v259_v35  ;;  %295 = vmatpush.bf16.xpose.msrb.mxu1 %v286_v36 }
 0x223   :  { %911 = vmatmul.msk.bf16.vlgmr.msrb.gmra.mxu0 %vm254_vm8, %v1163_v15  ;;  %912 = vmatmul.msk.bf16.vlgmr.msrb.gmra.mxu1 %vm254_vm8, %v1165_v16 }
 0x295   :  { %v324_v42 = vpop.f32.mrf.mxu2 }
 0x296   :  { %v383_v43 = vsel %vm1187_vm12, %v324_v42, -1e+30 }
 0x297   :  { %v400_v44 = vsel %vm387_vm13, %v383_v43, -inf }
 0x298   :  { %401 = vmax.xlane.f32.xlu2 %v400_v44 }
 0x29d   :  { %v326_v46 = vpop.f32.mrf.mxu2  ;;  %v351_v47 = vpop.f32.mrf.mxu3 }
 0x29e   :  { %v1200_v48 = vsel %vm1194_vm15, %v326_v46, -1e+30  ;;  %v385_v49 = vsel %vm1187_vm12, %v351_v47, -1e+30 }
 0x29f   :  { %v406_v50 = vsel %vm387_vm13, %v385_v49, -inf  ;;  %v403_v51 = vsel %vm387_vm13, %v1200_v48, -inf }
 0x2a0   :  { %407 = vmax.xlane.f32.xlu1 %v406_v50  ;;  %404 = vmax.xlane.f32.xlu0 %v403_v51  ;;  %v270_v52 = vpop.f32.mrf.mxu0  ;;  %v297_v54 = vpop.f32.mrf.mxu1 }
 0x2a1   :  { %v379_v53 = vsel %vm1187_vm12, %v270_v52, -1e+30  ;;  %v381_v56 = vsel %vm1187_vm12, %v297_v54, -1e+30 }
 0x2a2   :  { %v388_v55 = vsel %vm387_vm13, %v379_v53, -inf  ;;  %v394_v57 = vsel %vm387_vm13, %v381_v56, -inf }
 0x2a3   :  { %389 = vmax.xlane.f32.xlu2 %v388_v55 }
 0x2a5   :  { %v353_v1 = vpop.f32.mrf.mxu3 }
 0x2a6   :  { %v386_v3 = vsel %vm1194_vm15, %v353_v1, -1e+30 }
 0x2a7   :  { %v409_v4 = vsel %vm387_vm13, %v386_v3, -inf }
 0x2a8   :  { %395 = vmax.xlane.f32.xlu0 %v394_v57  ;;  %v272_v58 = vpop.f32.mrf.mxu0  ;;  %v299_v61 = vpop.f32.mrf.mxu1 }
 0x2a9   :  { %v380_v59 = vsel %vm1194_vm15, %v272_v58, -1e+30  ;;  %v382_v62 = vsel %vm1194_vm15, %v299_v61, -1e+30 }
 0x2aa   :  { %v391_v60 = vsel %vm387_vm13, %v380_v59, -inf  ;;  %v397_v63 = vsel %vm387_vm13, %v382_v62, -inf }
 0x2ab   :  { %392 = vmax.xlane.f32.xlu2 %v391_v60 }
 0x2b3   :  { %398 = vmax.xlane.f32.xlu2 %v397_v63 }
 0x2bb   :  { %410 = vmax.xlane.f32.xlu2 %v409_v4 }
 0x2d3   :  { %539 = vrot.lane.b32.xlu2 %v1169_v23, %s1036_s2 }
 0x30b   :  { %v402_v5 = vpop.xlane.xlu2 %401 }
 0x30c   :  { %v416_v13 = vsub.f32 %v383_v43, %v402_v5 }
 0x30e   :  { %v428_v24 = vmul.f32 1.442695, %v416_v13 }
 0x313   :  { %v405_v6 = vpop.xlane.xlu0 %404  ;;  %v408_v14 = vpop.xlane.xlu1 %407 }
 0x314   :  { %v418_v21 = vsub.f32 %v385_v49, %v408_v14  ;;  %v417_v32 = vsub.f32 %v1200_v48, %v405_v6 }
 0x316   :  { %v390_v7 = vpop.xlane.xlu2 %389  ;;  %v432_v25 = vmul.f32 1.442695, %v418_v21  ;;  %v430_v36 = vmul.f32 1.442695, %v417_v32 }
 0x317   :  { %v412_v8 = vsub.f32 %v379_v53, %v390_v7 }
 0x319   :  { %v420_v9 = vmul.f32 1.442695, %v412_v8 }
 0x31b   :  { %972 = vpow2.f32 %v420_v9  ;;  %v396_v11 = vpop.xlane.xlu0 %395 }
 0x31c   :  { %v414_v12 = vsub.f32 %v381_v56, %v396_v11 }
 0x31e   :  { %v424_v17 = vmul.f32 1.442695, %v414_v12  ;;  %v393_v18 = vpop.xlane.xlu2 %392 }
 0x31f   :  { %v413_v19 = vsub.f32 %v380_v59, %v393_v18 }
 0x320   :  { %974 = vpow2.f32 %v424_v17 }
 0x321   :  { %v1224_v20 = vpop.eup %972  ;;  %v422_v22 = vmul.f32 1.442695, %v413_v19 }
 0x322   :  { %v436_v23 = vsel %vm387_vm13, %v1224_v20, 0.0 }
 0x323   :  { %976 = vpow2.f32 %v422_v22  ;;  %437 = vadd.xlane.f32.xlu0 %v436_v23 }
 0x324   :  { %978 = vpow2.f32 %v428_v24 }
 0x325   :  { %980 = vpow2.f32 %v432_v25 }
 0x326   :  { %v975_v26 = vpop.eup %974  ;;  %v399_v27 = vpop.xlane.xlu2 %398 }
 0x327   :  { %v415_v29 = vsub.f32 %v382_v62, %v399_v27  ;;  %v442_v30 = vsel %vm387_vm13, %v975_v26, 0.0 }
 0x328   :  { %443 = vadd.xlane.f32.xlu1 %v442_v30 }
 0x329   :  { %v1229_v31 = vpop.eup %976  ;;  %v426_v33 = vmul.f32 1.442695, %v415_v29 }
 0x32a   :  { %v439_v34 = vsel %vm387_vm13, %v1229_v31, 0.0  ;;  %v979_v35 = vpop.eup %978 }
 0x32b   :  { %982 = vpow2.f32 %v426_v33  ;;  %440 = vadd.xlane.f32.xlu2 %v439_v34  ;;  %v1234_v38 = vpop.eup %980  ;;  %v448_v40 = vsel %vm387_vm13, %v979_v35, 0.0 }
 0x32c   :  { %984 = vpow2.f32 %v430_v36  ;;  %v454_v43 = vsel %vm387_vm13, %v1234_v38, 0.0  ;;  %v593_v36 = vld [vmem:[%s1337_s4 + $0x4] sm:$0xf] }
 0x32e   :  { %v411_v37 = vpop.xlane.xlu2 %410 }
 0x32f   :  { %v419_v39 = vsub.f32 %v386_v3, %v411_v37  ;;  %v631_v37 = vsel %vm604_vm1, %v593_v36, 0 }
 0x330   :  { %449 = vadd.xlane.f32.xlu1 %v448_v40  ;;  %v592_v40 = vld [vmem:[%s1337_s4] sm:$0xf] }
 0x331   :  { %v983_v41 = vpop.eup %982  ;;  %v434_v42 = vmul.f32 1.442695, %v419_v39 }
 0x332   :  { %v445_v44 = vsel %vm387_vm13, %v983_v41, 0.0  ;;  %v985_v46 = vpop.eup %984 }
 0x333   :  { %986 = vpow2.f32 %v434_v42  ;;  %455 = vadd.xlane.f32.xlu2 %v454_v43  ;;  %446 = vadd.xlane.f32.xlu0 %v445_v44  ;;  %v451_v48 = vsel %vm387_vm13, %v985_v46, 0.0  ;;  %v595_v43 = vld [vmem:[%s1337_s4 + $0xc] sm:$0xf] }
 0x334   :  { %v681_v44 = vsel %vm604_vm1, %v595_v43, 0 }
 0x336   :  { %v540_v45 = vpop.permute.xlu2 %539 }
 0x337   :  { %552 = vmatpush.bf16.msra.mxu2 %v540_v45 }
 0x339   :  { %v987_v47 = vpop.eup %986 }
 0x33a   :  { %v457_v49 = vsel %vm387_vm13, %v987_v47, 0.0 }
 0x33b   :  { %452 = vadd.xlane.f32.xlu0 %v451_v48  ;;  %458 = vadd.xlane.f32.xlu1 %v457_v49 }
 0x34b   :  { %514 = vrot.lane.b32.xlu2 %v1165_v16, %s1036_s2 }
 0x34f   :  { %489 = vrot.lane.b32.xlu0 %v1163_v15, %s1036_s2 }
 0x354   :  { %564 = vrot.lane.b32.xlu1 %v1172_v28, %s1036_s2 }
 0x396   :  { %v438_v51 = vpop.xlane.xlu0 %437 }
 0x39b   :  { %v444_v50 = vpop.xlane.xlu1 %443 }
 0x39c   :  { %988 = vrcp.f32 %v444_v50 }
 0x39e   :  { %v441_v52 = vpop.xlane.xlu2 %440 }
 0x3a2   :  { %v989_v56 = vpop.eup %988 }
 0x3a3   :  { %v450_v55 = vpop.xlane.xlu1 %449  ;;  %v470_v57 = vmul.f32 %v989_v56, %v975_v26 }
 0x3a5   :  { %v478_v59 = vpack.c.bf16 %v470_v57, %v470_v57 }
 0x3a6   :  { %v456_v53 = vpop.xlane.xlu2 %455  ;;  %v447_v54 = vpop.xlane.xlu0 %446 }
 0x3a7   :  { %990 = vrcp.f32 %v447_v54  ;;  %v511_v63 = vunpack.c.l.b16 %v478_v59 }
 0x3a8   :  { %992 = vrcp.f32 %v450_v55 }
 0x3a9   :  { %994 = vrcp.f32 %v441_v52 }
 0x3aa   :  { %996 = vrcp.f32 %v438_v51 }
 0x3ad   :  { %v991_v58 = vpop.eup %990 }
 0x3ae   :  { %v515_v16 = vpop.permute.xlu2 %514  ;;  %v471_v15 = vmul.f32 %v991_v58, %v983_v41  ;;  %v453_v60 = vpop.xlane.xlu0 %452  ;;  %v606_v41 = vsel %vm604_vm1, %v592_v40, 0 }
 0x3af   :  { %527 = vmatpush.bf16.msra.mxu1 %v515_v16  ;;  %v993_v28 = vpop.eup %992  ;;  %v459_v61 = vpop.xlane.xlu1 %458  ;;  %998 = vrcp.f32 %v453_v60 }
 0x3b0   :  { %v479_v62 = vpack.c.bf16 %v471_v15, %v471_v15  ;;  %v472_v1 = vmul.f32 %v993_v28, %v979_v35  ;;  %1000 = vrcp.f32 %v459_v61  ;;  %v995_v4 = vpop.eup %994 }
 0x3b1   :  { %v997_v5 = vpop.eup %996  ;;  %1002 = vrcp.f32 %v456_v53  ;;  %v469_v8 = vmul.f32 %v995_v4, %v1229_v31 }
 0x3b2   :  { %v512_v3 = vunpack.c.l.b16 %v479_v62  ;;  %v480_v9 = vpack.c.bf16 %v472_v1, %v472_v1  ;;  %v468_v13 = vmul.f32 %v997_v5, %v1224_v20 }
 0x3b3   :  { %v477_v18 = vpack.c.bf16 %v469_v8, %v469_v8  ;;  %640 = vmatpush.bf16.msrb.mxu1 %v631_v37 }
 0x3b4   :  { %v513_v6 = vpack.c.b16 %v512_v3, %v511_v63  ;;  %v536_v19 = vunpack.c.l.b16 %v480_v9  ;;  %v476_v24 = vpack.c.bf16 %v468_v13, %v468_v13 }
 0x3b5   :  { %v999_v7 = vpop.eup %998  ;;  %v487_v26 = vunpack.c.l.b16 %v477_v18 }
 0x3b6   :  { %v473_v11 = vmul.f32 %v999_v7, %v985_v46  ;;  %916 = vmatmul.msk.bf16.vlgmr.msra.gmra.mxu1 %vm387_vm13, %v513_v6  ;;  %v1001_v12 = vpop.eup %1000  ;;  %v486_v29 = vunpack.c.l.b16 %v476_v24 }
 0x3b7   :  { %v1003_v17 = vpop.eup %1002  ;;  %v475_v22 = vmul.f32 %v1001_v12, %v987_v47 }
 0x3b8   :  { %v481_v14 = vpack.c.bf16 %v473_v11, %v473_v11  ;;  %v474_v25 = vmul.f32 %v1003_v17, %v1234_v38  ;;  %v488_v32 = vpack.c.b16 %v487_v26, %v486_v29  ;;  %v594_v38 = vld [vmem:[%s1337_s4 + $0x8] sm:$0xf] }
 0x3b9   :  { %v483_v27 = vpack.c.bf16 %v475_v22, %v475_v22  ;;  %v656_v39 = vsel %vm604_vm1, %v594_v38, 0 }
 0x3ba   :  { %v537_v21 = vunpack.c.l.b16 %v481_v14  ;;  %v482_v31 = vpack.c.bf16 %v474_v25, %v474_v25  ;;  %665 = vmatpush.bf16.msrb.mxu2 %v656_v39 }
 0x3bb   :  { %v562_v20 = vunpack.c.l.b16 %v483_v27 }
 0x3bc   :  { %v538_v23 = vpack.c.b16 %v537_v21, %v536_v19  ;;  %v561_v33 = vunpack.c.l.b16 %v482_v31  ;;  %v961_v21 = vld [vmem:[%s1338_s5] ss:$0 sm:$0xff] }
 0x3be   :  { %917 = vmatmul.msk.bf16.vlgmr.msra.gmra.mxu2 %vm387_vm13, %v538_v23  ;;  %v563_v35 = vpack.c.b16 %v562_v20, %v561_v33 }
 0x3c1   :  { %v490_v30 = vpop.permute.xlu0 %489 }
 0x3c2   :  { %502 = vmatpush.bf16.msra.mxu0 %v490_v30 }
 0x3c5   :  { %915 = vmatmul.msk.bf16.vlgmr.msra.gmra.mxu0 %vm387_vm13, %v488_v32 }
 0x3c6   :  { %v565_v34 = vpop.permute.xlu1 %564  ;;  %615 = vmatpush.bf16.msrb.mxu0 %v606_v41 }
 0x3c7   :  { %577 = vmatpush.bf16.msra.mxu3 %v565_v34 }
 0x3ca   :  { %918 = vmatmul.msk.bf16.vlgmr.msra.gmra.mxu3 %vm387_vm13, %v563_v35 }
 0x3cb   :  { %690 = vmatpush.bf16.msrb.mxu3 %v681_v44 }
 0x433   :  { %v529_v42 = vpop.f32.mrf.mxu1 }
 0x434   :  { %v586_v45 = vpack.c.bf16 %v529_v42, %v529_v42 }
 0x436   :  { %v624_v48 = vunpack.c.l.b16 %v586_v45 }
 0x43b   :  { %v531_v46 = vpop.f32.mrf.mxu1 }
 0x43c   :  { %v587_v47 = vpack.c.bf16 %v531_v46, %v531_v46 }
 0x43e   :  { %v625_v49 = vunpack.c.l.b16 %v587_v47 }
 0x440   :  { %v626_v50 = vpack.c.b16 %v625_v49, %v624_v48  ;;  %v950_v49 = vld [vmem:[%s1341_s8 + $0x8] sm:$0xff] }
 0x441   :  { %v554_v51 = vpop.f32.mrf.mxu2  ;;  %805 = vmatpush.bf16.msra.mxu0 %v950_v49 }
 0x442   :  { %v504_v52 = vpop.f32.mrf.mxu0  ;;  %920 = vmatmul.msk.bf16.vlgmr.msrb.gmra.mxu1 %vm254_vm8, %v626_v50  ;;  %v588_v53 = vpack.c.bf16 %v554_v51, %v554_v51 }
 0x443   :  { %v584_v54 = vpack.c.bf16 %v504_v52, %v504_v52  ;;  %v949_v52 = vld [vmem:[%s1341_s8] sm:$0xff] }
 0x444   :  { %v649_v16 = vunpack.c.l.b16 %v588_v53 }
 0x445   :  { %v598_v59 = vunpack.c.l.b16 %v584_v54  ;;  %806 = vmatpush.bf16.msra.mxu0 %v949_v52 }
 0x449   :  { %v556_v55 = vpop.f32.mrf.mxu2 }
 0x44a   :  { %v506_v56 = vpop.f32.mrf.mxu0  ;;  %v589_v57 = vpack.c.bf16 %v556_v55, %v556_v55 }
 0x44b   :  { %v585_v58 = vpack.c.bf16 %v506_v56, %v506_v56 }
 0x44c   :  { %v650_v15 = vunpack.c.l.b16 %v589_v57 }
 0x44d   :  { %v599_v60 = vunpack.c.l.b16 %v585_v58  ;;  %v579_v28 = vpop.f32.mrf.mxu3 }
 0x44e   :  { %v651_v61 = vpack.c.b16 %v650_v15, %v649_v16  ;;  %v590_v63 = vpack.c.bf16 %v579_v28, %v579_v28 }
 0x44f   :  { %v600_v62 = vpack.c.b16 %v599_v60, %v598_v59 }
 0x450   :  { %921 = vmatmul.msk.bf16.vlgmr.msrb.gmra.mxu2 %vm254_vm8, %v651_v61  ;;  %v674_v4 = vunpack.c.l.b16 %v590_v63 }
 0x451   :  { %919 = vmatmul.msk.bf16.vlgmr.msrb.gmra.mxu0 %vm254_vm8, %v600_v62 }
 0x455   :  { %v581_v1 = vpop.f32.mrf.mxu3 }
 0x456   :  { %v591_v3 = vpack.c.bf16 %v581_v1, %v581_v1 }
 0x458   :  { %v675_v5 = vunpack.c.l.b16 %v591_v3 }
 0x45a   :  { %v676_v6 = vpack.c.b16 %v675_v5, %v674_v4 }
 0x45c   :  { %922 = vmatmul.msk.bf16.vlgmr.msrb.gmra.mxu3 %vm254_vm8, %v676_v6  ;;  %v963_v6 = vld [vmem:[%s1340_s7] ss:$0 sm:$0xff] }
 0x4bf   :  { %v642_v8 = vpop.f32.mrf.mxu1 }
 0x4c0   :  { %v698_v12 = vsel %vm47_vm0, %v642_v8, 0.0 }
 0x4c7   :  { %v644_v24 = vpop.f32.mrf.mxu1 }
 0x4c8   :  { %v705_v29 = vsel %vm47_vm0, %v644_v24, 0.0 }
 0x4ce   :  { %v617_v7 = vpop.f32.mrf.mxu0 }
 0x4cf   :  { %v697_v11 = vsel %vm47_vm0, %v617_v7, 0.0 }
 0x4d0   :  { %v699_v14 = vadd.f32 %v698_v12, %v697_v11 }
 0x4d3   :  { %v667_v9 = vpop.f32.mrf.mxu2 }
 0x4d4   :  { %v700_v13 = vsel %vm47_vm0, %v667_v9, 0.0 }
 0x4d5   :  { %v701_v17 = vadd.f32 %v700_v13, %v699_v14  ;;  %v952_v14 = vld [vmem:[%s1343_s10 + $0x8] sm:$0xff] }
 0x4d6   :  { %v619_v18 = vpop.f32.mrf.mxu0  ;;  %845 = vmatpush.bf16.msra.mxu1 %v952_v14 }
 0x4d7   :  { %v704_v26 = vsel %vm47_vm0, %v619_v18, 0.0 }
 0x4d8   :  { %v706_v31 = vadd.f32 %v705_v29, %v704_v26 }
 0x4db   :  { %v669_v23 = vpop.f32.mrf.mxu2 }
 0x4dc   :  { %v707_v30 = vsel %vm47_vm0, %v669_v23, 0.0 }
 0x4dd   :  { %v708_v20 = vadd.f32 %v707_v30, %v706_v31 }
 0x4df   :  { %v692_v19 = vpop.f32.mrf.mxu3 }
 0x4e0   :  { %v702_v22 = vsel %vm47_vm0, %v692_v19, 0.0  ;;  %v964_v19 = vld [vmem:[%s1342_s9] ss:$0 sm:$0xff] }
 0x4e1   :  { %v703_v25 = vadd.f32 %v702_v22, %v701_v17  ;;  %v951_v17 = vld [vmem:[%s1343_s10] sm:$0xff]  ;;  %s1037_s10 = smov [#allocation2]  }
 0x4e2   :  { %846 = vmatpush.bf16.msra.mxu1 %v951_v17  ;;  %s861_s9 = sshll.u32 %s1037_s10, 4  ;;  %s862_s9 = int_to_ptr.vmem [resolvable:$true] %s861_s9 }
 0x4e3   :  { %v715_v27 = vadd.f32 %v961_v21, %v703_v25 }
 0x4e5   :  { %v1282_v32 = vadd.f32 %v715_v27, %v1108_v0  ;;  %v965_v27 = vld [vmem:[%s1344_s11] ss:$0 sm:$0xff]  ;;  %s1038_s11 = smov 128  }
 0x4e7   :  { %v694_v33 = vpop.f32.mrf.mxu3  ;;  %v721_v34 = vsel %vm47_vm0, %v1282_v32, 0.0 }
 0x4e8   :  { %v709_v35 = vsel %vm47_vm0, %v694_v33, 0.0  ;;  %722 = vadd.xlane.f32.xlu0 %v721_v34 }
 0x4e9   :  { %v710_v36 = vadd.f32 %v709_v35, %v708_v20 }
 0x4eb   :  { %v716_v37 = vadd.f32 %v961_v21, %v710_v36 }
 0x4ed   :  { %v1288_v38 = vadd.f32 %v716_v37, %v1115_v2 }
 0x4ef   :  { %v724_v39 = vsel %vm47_vm0, %v1288_v38, 0.0 }
 0x4f0   :  { %725 = vadd.xlane.f32.xlu1 %v724_v39 }
 0x55b   :  { %v723_v40 = vpop.xlane.xlu0 %722 }
 0x55c   :  { %v727_v0 = vmul.f32 %v723_v40, %v1119_v10 }
 0x55e   :  { %v729_v41 = vsub.f32 %v1282_v32, %v727_v0 }
 0x560   :  { %v731_v42 = vmul.f32 %v729_v41, %v729_v41 }
 0x562   :  { %v733_v43 = vsel %vm47_vm0, %v731_v42, 0.0 }
 0x563   :  { %734 = vadd.xlane.f32.xlu2 %v733_v43  ;;  %v726_v44 = vpop.xlane.xlu1 %725 }
 0x564   :  { %v728_v45 = vmul.f32 %v726_v44, %v1119_v10 }
 0x566   :  { %v730_v46 = vsub.f32 %v1288_v38, %v728_v45 }
 0x568   :  { %v732_v2 = vmul.f32 %v730_v46, %v730_v46 }
 0x56a   :  { %v736_v47 = vsel %vm47_vm0, %v732_v2, 0.0 }
 0x56b   :  { %737 = vadd.xlane.f32.xlu0 %v736_v47 }
 0x5d6   :  { %v735_v48 = vpop.xlane.xlu2 %734 }
 0x5d7   :  { %v739_v50 = vmul.f32 %v735_v48, %v1119_v10 }
 0x5d9   :  { %v741_v51 = vadd.f32 1e-05, %v739_v50 }
 0x5db   :  { %1004 = vrsqrt.f32 %v741_v51  ;;  %vm749_vm3 = vweird.f32 %v741_v51 }
 0x5de   :  { %v738_v53 = vpop.xlane.xlu0 %737 }
 0x5df   :  { %v740_v54 = vmul.f32 %v738_v53, %v1119_v10  ;;  %v962_v10 = vld [vmem:[%s1339_s6] ss:$0 sm:$0xff] }
 0x5e1   :  { %v1005_v55 = vpop.eup %1004  ;;  %v742_v56 = vadd.f32 1e-05, %v740_v54 }
 0x5e2   :  { %v744_v57 = vmul.f32 %v1005_v55, %v741_v51  ;;  %vm750_vm2 = vweird.f32 %v1005_v55 }
 0x5e3   :  { %1006 = vrsqrt.f32 %v742_v56  ;;  %vm751_vm4 = vmor %vm749_vm3, %vm750_vm2  ;;  %vm759_vm6 = vweird.f32 %v742_v56 }
 0x5e4   :  { %v745_v58 = vmul.f32 %v1005_v55, %v744_v57 }
 0x5e6   :  { %v746_v16 = vmul.f32 0.5, %v745_v58 }
 0x5e8   :  { %v747_v59 = vsub.f32 1.5, %v746_v16 }
 0x5e9   :  { %v1007_v15 = vpop.eup %1006 }
 0x5ea   :  { %v748_v60 = vmul.f32 %v1005_v55, %v747_v59  ;;  %v754_v28 = vmul.f32 %v1007_v15, %v742_v56  ;;  %vm760_vm5 = vweird.f32 %v1007_v15 }
 0x5eb   :  { %vm761_vm7 = vmor %vm759_vm6, %vm760_vm5 }
 0x5ec   :  { %v755_v61 = vmul.f32 %v1007_v15, %v754_v28  ;;  %v752_v62 = vsel %vm751_vm4, %v1005_v55, %v748_v60 }
 0x5ed   :  { %v763_v3 = vmul.f32 %v752_v62, %v729_v41 }
 0x5ee   :  { %v756_v63 = vmul.f32 0.5, %v755_v61 }
 0x5ef   :  { %v768_v7 = vmul.f32 %v962_v10, %v763_v3 }
 0x5f0   :  { %v757_v1 = vsub.f32 1.5, %v756_v63 }
 0x5f1   :  { %v773_v11 = vadd.f32 %v963_v6, %v768_v7 }
 0x5f2   :  { %v758_v4 = vmul.f32 %v1007_v15, %v757_v1 }
 0x5f4   :  { %v762_v5 = vsel %vm761_vm7, %v1007_v15, %v758_v4 }
 0x5f5   :  { %v764_v8 = vmul.f32 %v762_v5, %v730_v46 }
 0x5f7   :  { %v769_v9 = vmul.f32 %v962_v10, %v764_v8 }
 0x5f9   :  { %v774_v12 = vadd.f32 %v963_v6, %v769_v9 }
 0x5fb   :  { %v775_v13 = vpack.c.bf16 %v774_v12, %v773_v11 }
 0x5fd   :  { %931 = vmatmul.msk.bf16.vlgmr.msra.gmra.mxu0 %vm47_vm0, %v775_v13 }
 0x67a   :  { %v808_v18 = vpop.f32.mrf.mxu0 }
 0x67b   :  { %v809_v21 = vadd.f32 %v964_v19, %v808_v18 }
 0x67d   :  { %v813_v23 = vmax.f32 %v809_v21, 0.0 }
 0x682   :  { %v810_v22 = vpop.f32.mrf.mxu0 }
 0x683   :  { %v811_v24 = vadd.f32 %v964_v19, %v810_v22 }
 0x685   :  { %v814_v25 = vmax.f32 %v811_v24, 0.0 }
 0x687   :  { %v815_v26 = vpack.c.bf16 %v814_v25, %v813_v23 }
 0x689   :  { %940 = vmatmul.msk.bf16.vlgmr.msra.gmra.mxu1 %vm47_vm0, %v815_v26 }
 0x706   :  { %v848_v29 = vpop.f32.mrf.mxu1 }
 0x707   :  { %v849_v30 = vadd.f32 %v965_v27, %v848_v29 }
 0x709   :  { %v853_v31 = vadd.f32 %v849_v30, %v1282_v32 }
 0x70b   :  { %855 = vst.msk [vmem:[#allocation2] sm:$0xff] %vm47_vm0, %v853_v31 }
 0x70e   :  { %v850_v20 = vpop.f32.mrf.mxu1 }
 0x70f   :  { %v851_v33 = vadd.f32 %v965_v27, %v850_v20 }
 0x711   :  { %v854_v34 = vadd.f32 %v851_v33, %v1288_v38 }
 0x713   :  { %856 = vst.msk [vmem:[#allocation2 + $0x8] sm:$0xff] %vm47_vm0, %v854_v34 }
 0x714   :  { %869 = dma.vmem_to_hbm [thread:$0]  %s862_s9, 256, %s864_s25, [#allocation3], %s1038_s11, %s1038_s11, %s1039_s26  }
 0x715   :  { %1032 = dma.done.wait [#allocation3], 256  }
 0x716   :  { %1033 = vsyncadd [#allocation3], 4294967040 }
 0x717   :  { %874 = vsyncpa [#allocation3], 1 }

</bundles_post_ra>
